<compile_context>
chip_gen: v7x
topology: tpu7x:2x2x1
jax: 0.10.0
libtpu: 0.0.40
codegen_flags: <defaults>
</compile_context>

<pallas_src>
import math
import numpy as np
import jax
import jax.numpy as jnp
from jax import lax
from jax.experimental import pallas as pl
from jax.experimental.pallas import tpu as pltpu


def _round_up(a, m):
    return ((a + m - 1) // m) * m


def make_ehrnn_kernel(seq_len, tb, halo_rows, input_size, hidden, num_ehs,
                      num_classes, eh_lengths, out_width, fast):
    eh_lengths = tuple(int(l) for l in eh_lengths)
    mm_dtype = jnp.bfloat16 if fast else jnp.float32
    R = halo_rows + tb                       # rows processed per tile (halo + main)

    def recip(x):
        return pl.reciprocal(x, approx=True) if fast else 1.0 / x

    def kernel(x_ref, halo_ref, wih_ref, whh_ref, brnn_ref, w1_ref, wle_ref,
               blin_ref, out_ref):
        b = pl.program_id(0)

        # ---- assemble tile rows = [halo (previous rows, zeros before row 0) | tile] ----
        x_ext = jnp.concatenate([halo_ref[0], x_ref[...]], axis=1)   # (seq, R, in)

        # ---- Elman RNN (h0 = 0, tanh); input projection hoisted to ONE big-M matmul ----
        xw = jnp.dot(x_ext.reshape(seq_len * R, input_size), wih_ref[...],
                     preferred_element_type=jnp.float32)             # (seq*R, hidden)
        b_rnn = brnn_ref[...]                                        # (1, hidden) f32
        h = jnp.tanh(xw[:R] + b_rnn)                                 # t == 0 peeled (h0=0)
        if seq_len > 1:
            whh = whh_ref[...]
            # static (8-aligned) slices of the hoisted xw; fully unrolled chain.
            for t in range(1, seq_len):
                pre = (xw[t * R:(t + 1) * R]
                       + jnp.dot(h.astype(mm_dtype), whh,
                                 preferred_element_type=jnp.float32)
                       + b_rnn)
                h = jnp.tanh(pre)

        # ---- fused AvgPool1d + linear(rnn_out): ONE h @ [W_lin_h_pad128 | pool] ----
        hp = jnp.dot(h.astype(mm_dtype), w1_ref[...],
                     preferred_element_type=jnp.float32)      # (R, out_width + num_ehs)
        logits = hp[halo_rows:, :out_width] + blin_ref[...]   # lane/sublane-aligned slices
        pooled = hp[:, out_width:]                            # (R, num_ehs)

        # zero pooled rows that precede global batch row 0 (only tile 0's halo)
        ridx = lax.broadcasted_iota(jnp.int32, (R, 1), 0)
        row_g = ridx + (b * tb - halo_rows)
        pooled = jnp.where(row_g >= 0, pooled, 0.0)

        # ---- inclusive prefix sum over the R rows (Hillis-Steele, XLU rolls) ----
        cum = pooled
        s = 1
        while s < R:
            cum = cum + jnp.where(ridx >= s, pltpu.roll(cum, shift=s, axis=0), 0.0)
            s *= 2
        cum_main = cum[halo_rows:]                             # (tb, num_ehs)

        # ---- sliding-window means: one XLU roll + one K=num_ehs matmul per length ----
        seen = lax.broadcasted_iota(jnp.int32, (tb, 1), 0) + b * tb + 1
        for j, L in enumerate(eh_lengths):
            prev = pltpu.roll(cum, shift=L, axis=0)[halo_rows:]   # cum at (row - L)
            cnt = jnp.minimum(seen, L).astype(jnp.float32)
            est = (cum_main - prev) * recip(cnt)                  # (tb, num_ehs)
            logits = logits + jnp.dot(est.astype(mm_dtype), wle_ref[j],
                                      preferred_element_type=jnp.float32)

        # ---- Softmax(dim=1); pad columns carry bias -1e30 -> exact zeros ----
        m = jnp.max(logits, axis=1, keepdims=True)
        e = jnp.exp(logits - m)
        out_ref[...] = e * recip(jnp.sum(e, axis=1, keepdims=True))

    return kernel


def ehrnn_forward(x, params, *, seq_len, input_size, hidden_size, num_classes,
                  eh_lengths, block_batch=1024, fast=False):
    B = x.shape[0]
    x = x.reshape(B, seq_len, input_size).astype(jnp.float32)
    x_sbi = jnp.transpose(x, (1, 0, 2))                        # (seq, batch, input)

    k = int(math.floor(math.sqrt(hidden_size)))
    num_ehs = math.floor((hidden_size - k) / k + 1)
    nl = len(eh_lengths)
    max_len = max(int(l) for l in eh_lengths)
    halo_rows = _round_up(max_len, 8)                          # per-tile halo depth

    # ---- batch tiling (pads never affect real rows; halo makes tiles independent) ----
    tb = max(8, min(int(block_batch), _round_up(B, 8)))
    tb = max(_round_up(tb, 8), halo_rows)                      # halo must fit in one tile
    b_pad = _round_up(B, tb)
    nb = b_pad // tb
    if b_pad != B:
        x_sbi = jnp.pad(x_sbi, ((0, 0), (0, b_pad - B), (0, 0)))

    mm_dtype = jnp.bfloat16 if fast else jnp.float32
    out_width = _round_up(num_classes, 128)                    # lane-dense output slab

    # halo input: for tile b, x rows [b*tb - halo_rows, b*tb) (zeros before row 0)
    pad_front = jnp.concatenate(
        [jnp.zeros((seq_len, halo_rows, input_size), jnp.float32), x_sbi], axis=1)
    halo = pad_front[:, :nb * tb].reshape(seq_len, nb, tb, input_size)[:, :, :halo_rows]
    halo = jnp.transpose(halo, (1, 0, 2, 3))                   # (nb, seq, halo, input)

    # AvgPool1d(kernel=k, stride=k) as a (hidden, num_ehs) matrix (tail channels dropped)
    pool = np.zeros((hidden_size, num_ehs), np.float32)
    for i in range(num_ehs):
        pool[i * k:(i + 1) * k, i] = 1.0 / k

    wih_t = params["w_ih"].T.astype(mm_dtype)
    whh_t = params["w_hh"].T.astype(mm_dtype)
    b_rnn = (params["b_ih"] + params["b_hh"]).reshape(1, hidden_size).astype(jnp.float32)

    w_lin = params["w_lin"]                                    # (classes, hidden + num_ehs*nl)
    # fused lane-aligned [linear-on-rnn_out padded to out_width | pool] weight
    w_lin_h = jnp.zeros((hidden_size, out_width), jnp.float32)
    w_lin_h = w_lin_h.at[:, :num_classes].set(w_lin[:, :hidden_size].T)
    w1 = jnp.concatenate([w_lin_h, jnp.asarray(pool)], axis=1).astype(mm_dtype)

    # estimate weights: feature index hidden + i*nl + j  (channel i, length j)
    w_est = w_lin[:, hidden_size:].reshape(num_classes, num_ehs, nl)
    wle3 = jnp.zeros((nl, num_ehs, out_width), jnp.float32)
    wle3 = wle3.at[:, :, :num_classes].set(jnp.transpose(w_est, (2, 1, 0)))
    wle3 = wle3.astype(mm_dtype)

    # bias padded with -1e30 so softmax over pad lanes yields exact zeros
    b_lin = jnp.full((1, out_width), -1e30, jnp.float32)
    b_lin = b_lin.at[0, :num_classes].set(params["b_lin"].astype(jnp.float32))

    x_sbi = x_sbi.astype(mm_dtype)
    halo = halo.astype(mm_dtype)

    kernel = make_ehrnn_kernel(seq_len, tb, halo_rows, input_size, hidden_size,
                               num_ehs, num_classes, eh_lengths, out_width, fast)

    def full(arr):                                             # resident weight block
        shape = arr.shape
        return pl.BlockSpec(shape, lambda b, n=len(shape): (0,) * n)

    grid_spec = pltpu.PrefetchScalarGridSpec(
        num_scalar_prefetch=0,
        grid=(nb,),
        in_specs=[
            pl.BlockSpec((seq_len, tb, input_size), lambda b: (0, b, 0)),
            pl.BlockSpec((1, seq_len, halo_rows, input_size), lambda b: (b, 0, 0, 0)),
            full(wih_t),
            full(whh_t),
            full(b_rnn),
            full(w1),
            full(wle3),
            full(b_lin),
        ],
        out_specs=pl.BlockSpec((tb, out_width), lambda b: (b, 0)),
    )

    # explicit scoped-VMEM limit: mainly helps v5e (16 MiB default); capped < v7x 64 MiB
    itemsize = 2 if fast else 4
    need = (2 * seq_len * tb * input_size * itemsize
            + 2 * seq_len * halo_rows * input_size * itemsize
            + 2 * tb * out_width * 4
            + (wih_t.size + whh_t.size + w1.size + wle3.size) * itemsize
            + (b_rnn.size + b_lin.size) * 4)
    vmem_limit = int(min(48 * 2**20, max(32 * 2**20, 4 * need)))

    out = pl.pallas_call(
        kernel,
        out_shape=jax.ShapeDtypeStruct((b_pad, out_width), jnp.float32),
        grid_spec=grid_spec,
        # tiles are independent (halo recompute) -> parallel grid, shards across
        # both TensorCores on v7x; no effect (but no cost) on v5e/v6e.
        compiler_params=pltpu.CompilerParams(
            dimension_semantics=("parallel",),
            vmem_limit_bytes=vmem_limit),
    )(x_sbi, halo, wih_t, whh_t, b_rnn, w1, wle3, b_lin)

    return out[:B, :num_classes]


def ref_forward(x, params, *, seq_len, input_size, hidden_size, num_classes,
                eh_lengths):
    """Pure numpy reference mirroring the PyTorch module's semantics."""
    x = np.asarray(x, np.float64).reshape(-1, seq_len, input_size)
    B = x.shape[0]
    w_ih = np.asarray(params["w_ih"], np.float64)
    w_hh = np.asarray(params["w_hh"], np.float64)
    b_ih = np.asarray(params["b_ih"], np.float64)
    b_hh = np.asarray(params["b_hh"], np.float64)
    h = np.zeros((B, hidden_size))
    for t in range(seq_len):
        h = np.tanh(x[:, t] @ w_ih.T + b_ih + h @ w_hh.T + b_hh)
    rnn_out = h                                            # seq_len == 1

    k = int(math.floor(math.sqrt(hidden_size)))
    num_ehs = math.floor((hidden_size - k) / k + 1)
    pooled = np.stack([rnn_out[:, i * k:(i + 1) * k].mean(axis=1)
                       for i in range(num_ehs)], axis=1)

    histories = [[[] for _ in eh_lengths] for _ in range(num_ehs)]
    all_means = []
    for p in range(B):
        for i in range(num_ehs):
            for j in range(len(eh_lengths)):
                histories[i][j].append(pooled[p, i])
        ests = []
        for i in range(num_ehs):
            for j, L in enumerate(eh_lengths):
                window = histories[i][j][-L:]
                ests.append(sum(window) / len(window))
        all_means.append(ests)
    all_means = np.asarray(all_means)

    lin_in = np.concatenate([rnn_out, all_means], axis=1)
    logits = lin_in @ np.asarray(params["w_lin"], np.float64).T \
        + np.asarray(params["b_lin"], np.float64)
    e = np.exp(logits - logits.max(axis=1, keepdims=True))
    return e / e.sum(axis=1, keepdims=True)


if __name__ == "__main__":
    seq_len = 1          # EHRNN.forward only type-checks for seq_len == 1
    batch = 8
    input_size = 16
    hidden_size = 32
    num_classes = 4
    eh_lengths = (2, 4)

    k = int(math.floor(math.sqrt(hidden_size)))
    num_ehs = math.floor((hidden_size - k) / k + 1)
    feat = hidden_size + num_ehs * len(eh_lengths)         # inputToLinear='all', useMean only

    key = jax.random.PRNGKey(0)
    ks = jax.random.split(key, 7)
    s_rnn = 1.0 / math.sqrt(hidden_size)
    s_lin = 1.0 / math.sqrt(feat)
    params = {
        "w_ih": jax.random.uniform(ks[0], (hidden_size, input_size), jnp.float32, -s_rnn, s_rnn),
        "w_hh": jax.random.uniform(ks[1], (hidden_size, hidden_size), jnp.float32, -s_rnn, s_rnn),
        "b_ih": jax.random.uniform(ks[2], (hidden_size,), jnp.float32, -s_rnn, s_rnn),
        "b_hh": jax.random.uniform(ks[3], (hidden_size,), jnp.float32, -s_rnn, s_rnn),
        "w_lin": jax.random.uniform(ks[4], (num_classes, feat), jnp.float32, -s_lin, s_lin),
        "b_lin": jax.random.uniform(ks[5], (num_classes,), jnp.float32, -s_lin, s_lin),
    }
    x = jax.random.normal(ks[6], (batch, seq_len, input_size), jnp.float32)

    ref = ref_forward(np.asarray(x), {n: np.asarray(v) for n, v in params.items()},
                      seq_len=seq_len, input_size=input_size, hidden_size=hidden_size,
                      num_classes=num_classes, eh_lengths=eh_lengths)

    # Exact path: f32 MXU operands, exact divides (strict numerical parity).
    out = ehrnn_forward(x, params, seq_len=seq_len, input_size=input_size,
                        hidden_size=hidden_size, num_classes=num_classes,
                        eh_lengths=eh_lengths, fast=False)
    out = jax.block_until_ready(out)
    np.testing.assert_allclose(np.asarray(out), ref, rtol=1e-4, atol=1e-5)

    # Fast path (v6e/v7x oriented): bf16 MXU operands + approx EUP reciprocals
    # (rows sum to 1 only within ~2^-12 relative).
    out_fast = ehrnn_forward(x, params, seq_len=seq_len, input_size=input_size,
                             hidden_size=hidden_size, num_classes=num_classes,
                             eh_lengths=eh_lengths, fast=True)
    out_fast = jax.block_until_ready(out_fast)
    np.testing.assert_allclose(np.asarray(out_fast), ref, rtol=5e-2, atol=5e-3)

    print("KERNEL_OK")
</pallas_src>

<mosaic_0001>
module attributes {stable_mosaic.version = 11 : i64} {
  func.func @kernel(%arg0: i32, %arg1: memref<1x8x16xf32, #tpu.memory_space<vmem>>, %arg2: memref<1x1x8x16xf32, #tpu.memory_space<vmem>>, %arg3: memref<16x32xf32, #tpu.memory_space<vmem>>, %arg4: memref<32x32xf32, #tpu.memory_space<vmem>>, %arg5: memref<1x32xf32, #tpu.memory_space<vmem>>, %arg6: memref<32x134xf32, #tpu.memory_space<vmem>>, %arg7: memref<2x6x128xf32, #tpu.memory_space<vmem>>, %arg8: memref<1x128xf32, #tpu.memory_space<vmem>>, %arg9: memref<8x128xf32, #tpu.memory_space<vmem>>) attributes {dimension_semantics = [#tpu.dimension_semantics<parallel>], iteration_bounds = array<i64: 1>, scalar_prefetch = 0 : i64, scratch_operands = 0 : i64, tpu.core_type = #tpu.core_type<tc>, window_params = [{transform_indices = @transform_0, window_bounds = array<i64: 1, 8, 16>}, {transform_indices = @transform_1, window_bounds = array<i64: 1, 1, 8, 16>}, {pipeline_mode = #tpu.pipeline_mode<synchronous>, transform_indices = @transform_2, window_bounds = array<i64: 16, 32>}, {pipeline_mode = #tpu.pipeline_mode<synchronous>, transform_indices = @transform_3, window_bounds = array<i64: 32, 32>}, {pipeline_mode = #tpu.pipeline_mode<synchronous>, transform_indices = @transform_4, window_bounds = array<i64: 1, 32>}, {pipeline_mode = #tpu.pipeline_mode<synchronous>, transform_indices = @transform_5, window_bounds = array<i64: 32, 134>}, {pipeline_mode = #tpu.pipeline_mode<synchronous>, transform_indices = @transform_6, window_bounds = array<i64: 2, 6, 128>}, {pipeline_mode = #tpu.pipeline_mode<synchronous>, transform_indices = @transform_7, window_bounds = array<i64: 1, 128>}, {transform_indices = @transform_8, window_bounds = array<i64: 8, 128>}]} {
    %c0 = arith.constant 0 : index
    %c0_0 = arith.constant 0 : index
    %c0_1 = arith.constant 0 : index
    %c0_2 = arith.constant 0 : index
    %0 = vector.load %arg2[%c0, %c0_0, %c0_1, %c0_2] : memref<1x1x8x16xf32, #tpu.memory_space<vmem>>, vector<1x1x8x16xf32>
    %1 = vector.shape_cast %0 : vector<1x1x8x16xf32> to vector<1x8x16xf32>
    %c0_3 = arith.constant 0 : index
    %c0_4 = arith.constant 0 : index
    %c0_5 = arith.constant 0 : index
    %2 = vector.load %arg1[%c0_3, %c0_4, %c0_5] : memref<1x8x16xf32, #tpu.memory_space<vmem>>, vector<1x8x16xf32>
    %3 = tpu.concatenate %1, %2 in 1 : vector<1x8x16xf32>, vector<1x8x16xf32> -> vector<1x16x16xf32>
    %4 = vector.shape_cast %3 : vector<1x16x16xf32> to vector<16x16xf32>
    %c0_6 = arith.constant 0 : index
    %c0_7 = arith.constant 0 : index
    %5 = vector.load %arg3[%c0_6, %c0_7] : memref<16x32xf32, #tpu.memory_space<vmem>>, vector<16x32xf32>
    %cst = arith.constant dense<0.000000e+00> : vector<16x32xf32>
    %6 = tpu.matmul %4, %5, %cst {dimension_numbers = #tpu.dot_dimension_numbers<[1], [0], [0], [1], [0, 0, 1, 1], [], []>} : vector<16x16xf32>, vector<16x32xf32>, vector<16x32xf32> -> vector<16x32xf32>
    %c0_8 = arith.constant 0 : index
    %c0_9 = arith.constant 0 : index
    %7 = vector.load %arg5[%c0_8, %c0_9] : memref<1x32xf32, #tpu.memory_space<vmem>>, vector<1x32xf32>
    %8 = vector.broadcast %7 : vector<1x32xf32> to vector<16x32xf32>
    %9 = arith.addf %6, %8 : vector<16x32xf32>
    %10 = math.tanh %9 : vector<16x32xf32>
    %c0_10 = arith.constant 0 : index
    %c0_11 = arith.constant 0 : index
    %11 = vector.load %arg6[%c0_10, %c0_11] : memref<32x134xf32, #tpu.memory_space<vmem>>, vector<32x134xf32>
    %cst_12 = arith.constant dense<0.000000e+00> : vector<16x134xf32>
    %12 = tpu.matmul %10, %11, %cst_12 {dimension_numbers = #tpu.dot_dimension_numbers<[1], [0], [0], [1], [0, 0, 1, 1], [], []>} : vector<16x32xf32>, vector<32x134xf32>, vector<16x134xf32> -> vector<16x134xf32>
    %13 = vector.extract_strided_slice %12 {offsets = [8, 0], sizes = [8, 128], strides = [1, 1]} : vector<16x134xf32> to vector<8x128xf32>
    %c0_13 = arith.constant 0 : index
    %c0_14 = arith.constant 0 : index
    %14 = vector.load %arg8[%c0_13, %c0_14] : memref<1x128xf32, #tpu.memory_space<vmem>>, vector<1x128xf32>
    %15 = vector.broadcast %14 : vector<1x128xf32> to vector<8x128xf32>
    %16 = arith.addf %13, %15 : vector<8x128xf32>
    %17 = vector.extract_strided_slice %12 {offsets = [0, 128], sizes = [16, 6], strides = [1, 1]} : vector<16x134xf32> to vector<16x6xf32>
    %18 = tpu.iota {dimensions = array<i32: 0>} : vector<16x1xi32>
    %c8_i32 = arith.constant 8 : i32
    %19 = arith.muli %arg0, %c8_i32 : i32
    %c8_i32_15 = arith.constant 8 : i32
    %20 = arith.subi %19, %c8_i32_15 : i32
    %21 = vector.broadcast %20 : i32 to vector<16x1xi32>
    %22 = arith.addi %18, %21 : vector<16x1xi32>
    %c0_i32 = arith.constant 0 : i32
    %23 = vector.broadcast %c0_i32 : i32 to vector<16x1xi32>
    %24 = arith.cmpi sge, %22, %23 : vector<16x1xi32>
    %cst_16 = arith.constant 0.000000e+00 : f32
    %25 = vector.shape_cast %24 : vector<16x1xi1> to vector<16x1xi1>
    %26 = vector.broadcast %25 : vector<16x1xi1> to vector<16x6xi1>
    %27 = vector.broadcast %cst_16 : f32 to vector<16x6xf32>
    %28 = arith.select %26, %17, %27 : vector<16x6xi1>, vector<16x6xf32>
    %c1_i32 = arith.constant 1 : i32
    %29 = vector.broadcast %c1_i32 : i32 to vector<16x1xi32>
    %30 = arith.cmpi sge, %18, %29 : vector<16x1xi32>
    %c1_i32_17 = arith.constant 1 : i32
    %31 = tpu.dynamic_rotate %28 by %c1_i32_17 dim 0 : vector<16x6xf32>, i32 -> vector<16x6xf32>
    %cst_18 = arith.constant 0.000000e+00 : f32
    %32 = vector.shape_cast %30 : vector<16x1xi1> to vector<16x1xi1>
    %33 = vector.broadcast %32 : vector<16x1xi1> to vector<16x6xi1>
    %34 = vector.broadcast %cst_18 : f32 to vector<16x6xf32>
    %35 = arith.select %33, %31, %34 : vector<16x6xi1>, vector<16x6xf32>
    %36 = arith.addf %28, %35 : vector<16x6xf32>
    %c2_i32 = arith.constant 2 : i32
    %37 = vector.broadcast %c2_i32 : i32 to vector<16x1xi32>
    %38 = arith.cmpi sge, %18, %37 : vector<16x1xi32>
    %c2_i32_19 = arith.constant 2 : i32
    %39 = tpu.dynamic_rotate %36 by %c2_i32_19 dim 0 : vector<16x6xf32>, i32 -> vector<16x6xf32>
    %cst_20 = arith.constant 0.000000e+00 : f32
    %40 = vector.shape_cast %38 : vector<16x1xi1> to vector<16x1xi1>
    %41 = vector.broadcast %40 : vector<16x1xi1> to vector<16x6xi1>
    %42 = vector.broadcast %cst_20 : f32 to vector<16x6xf32>
    %43 = arith.select %41, %39, %42 : vector<16x6xi1>, vector<16x6xf32>
    %44 = arith.addf %36, %43 : vector<16x6xf32>
    %c4_i32 = arith.constant 4 : i32
    %45 = vector.broadcast %c4_i32 : i32 to vector<16x1xi32>
    %46 = arith.cmpi sge, %18, %45 : vector<16x1xi32>
    %c4_i32_21 = arith.constant 4 : i32
    %47 = tpu.dynamic_rotate %44 by %c4_i32_21 dim 0 : vector<16x6xf32>, i32 -> vector<16x6xf32>
    %cst_22 = arith.constant 0.000000e+00 : f32
    %48 = vector.shape_cast %46 : vector<16x1xi1> to vector<16x1xi1>
    %49 = vector.broadcast %48 : vector<16x1xi1> to vector<16x6xi1>
    %50 = vector.broadcast %cst_22 : f32 to vector<16x6xf32>
    %51 = arith.select %49, %47, %50 : vector<16x6xi1>, vector<16x6xf32>
    %52 = arith.addf %44, %51 : vector<16x6xf32>
    %c8_i32_23 = arith.constant 8 : i32
    %53 = vector.broadcast %c8_i32_23 : i32 to vector<16x1xi32>
    %54 = arith.cmpi sge, %18, %53 : vector<16x1xi32>
    %c8_i32_24 = arith.constant 8 : i32
    %55 = tpu.dynamic_rotate %52 by %c8_i32_24 dim 0 : vector<16x6xf32>, i32 -> vector<16x6xf32>
    %cst_25 = arith.constant 0.000000e+00 : f32
    %56 = vector.shape_cast %54 : vector<16x1xi1> to vector<16x1xi1>
    %57 = vector.broadcast %56 : vector<16x1xi1> to vector<16x6xi1>
    %58 = vector.broadcast %cst_25 : f32 to vector<16x6xf32>
    %59 = arith.select %57, %55, %58 : vector<16x6xi1>, vector<16x6xf32>
    %60 = arith.addf %52, %59 : vector<16x6xf32>
    %61 = vector.extract_strided_slice %60 {offsets = [8, 0], sizes = [8, 6], strides = [1, 1]} : vector<16x6xf32> to vector<8x6xf32>
    %62 = tpu.iota {dimensions = array<i32: 0>} : vector<8x1xi32>
    %c8_i32_26 = arith.constant 8 : i32
    %63 = arith.muli %arg0, %c8_i32_26 : i32
    %64 = vector.broadcast %63 : i32 to vector<8x1xi32>
    %65 = arith.addi %62, %64 : vector<8x1xi32>
    %c1_i32_27 = arith.constant 1 : i32
    %66 = vector.broadcast %c1_i32_27 : i32 to vector<8x1xi32>
    %67 = arith.addi %65, %66 : vector<8x1xi32>
    %c2_i32_28 = arith.constant 2 : i32
    %68 = tpu.dynamic_rotate %60 by %c2_i32_28 dim 0 : vector<16x6xf32>, i32 -> vector<16x6xf32>
    %69 = vector.extract_strided_slice %68 {offsets = [8, 0], sizes = [8, 6], strides = [1, 1]} : vector<16x6xf32> to vector<8x6xf32>
    %c2_i32_29 = arith.constant 2 : i32
    %70 = vector.broadcast %c2_i32_29 : i32 to vector<8x1xi32>
    %71 = arith.minsi %67, %70 : vector<8x1xi32>
    %72 = arith.sitofp %71 : vector<8x1xi32> to vector<8x1xf32>
    %73 = arith.subf %61, %69 : vector<8x6xf32>
    %cst_30 = arith.constant 1.000000e+00 : f32
    %74 = vector.broadcast %cst_30 : f32 to vector<8x1xf32>
    %75 = arith.divf %74, %72 : vector<8x1xf32>
    %76 = vector.broadcast %75 : vector<8x1xf32> to vector<8x6xf32>
    %77 = arith.mulf %73, %76 : vector<8x6xf32>
    %c0_31 = arith.constant 0 : index
    %c0_32 = arith.constant 0 : index
    %c0_33 = arith.constant 0 : index
    %78 = vector.load %arg7[%c0_31, %c0_32, %c0_33] : memref<2x6x128xf32, #tpu.memory_space<vmem>>, vector<1x6x128xf32>
    %79 = vector.shape_cast %78 : vector<1x6x128xf32> to vector<6x128xf32>
    %cst_34 = arith.constant dense<0.000000e+00> : vector<8x128xf32>
    %80 = tpu.matmul %77, %79, %cst_34 {dimension_numbers = #tpu.dot_dimension_numbers<[1], [0], [0], [1], [0, 0, 1, 1], [], []>} : vector<8x6xf32>, vector<6x128xf32>, vector<8x128xf32> -> vector<8x128xf32>
    %81 = arith.addf %16, %80 : vector<8x128xf32>
    %c4_i32_35 = arith.constant 4 : i32
    %82 = tpu.dynamic_rotate %60 by %c4_i32_35 dim 0 : vector<16x6xf32>, i32 -> vector<16x6xf32>
    %83 = vector.extract_strided_slice %82 {offsets = [8, 0], sizes = [8, 6], strides = [1, 1]} : vector<16x6xf32> to vector<8x6xf32>
    %c4_i32_36 = arith.constant 4 : i32
    %84 = vector.broadcast %c4_i32_36 : i32 to vector<8x1xi32>
    %85 = arith.minsi %67, %84 : vector<8x1xi32>
    %86 = arith.sitofp %85 : vector<8x1xi32> to vector<8x1xf32>
    %87 = arith.subf %61, %83 : vector<8x6xf32>
    %cst_37 = arith.constant 1.000000e+00 : f32
    %88 = vector.broadcast %cst_37 : f32 to vector<8x1xf32>
    %89 = arith.divf %88, %86 : vector<8x1xf32>
    %90 = vector.broadcast %89 : vector<8x1xf32> to vector<8x6xf32>
    %91 = arith.mulf %87, %90 : vector<8x6xf32>
    %c1 = arith.constant 1 : index
    %c0_38 = arith.constant 0 : index
    %c0_39 = arith.constant 0 : index
    %92 = vector.load %arg7[%c1, %c0_38, %c0_39] : memref<2x6x128xf32, #tpu.memory_space<vmem>>, vector<1x6x128xf32>
    %93 = vector.shape_cast %92 : vector<1x6x128xf32> to vector<6x128xf32>
    %cst_40 = arith.constant dense<0.000000e+00> : vector<8x128xf32>
    %94 = tpu.matmul %91, %93, %cst_40 {dimension_numbers = #tpu.dot_dimension_numbers<[1], [0], [0], [1], [0, 0, 1, 1], [], []>} : vector<8x6xf32>, vector<6x128xf32>, vector<8x128xf32> -> vector<8x128xf32>
    %95 = arith.addf %81, %94 : vector<8x128xf32>
    %cst_41 = arith.constant dense<0xFF800000> : vector<8xf32>
    %96 = vector.multi_reduction <maximumf>, %95, %cst_41 [1] : vector<8x128xf32> to vector<8xf32>
    %97 = vector.shape_cast %96 : vector<8xf32> to vector<8x1xf32>
    %98 = vector.broadcast %97 : vector<8x1xf32> to vector<8x128xf32>
    %99 = arith.subf %95, %98 : vector<8x128xf32>
    %100 = math.exp %99 : vector<8x128xf32>
    %cst_42 = arith.constant dense<0.000000e+00> : vector<8xf32>
    %101 = vector.multi_reduction <add>, %100, %cst_42 [1] : vector<8x128xf32> to vector<8xf32>
    %102 = vector.shape_cast %101 : vector<8xf32> to vector<8x1xf32>
    %cst_43 = arith.constant 1.000000e+00 : f32
    %103 = vector.broadcast %cst_43 : f32 to vector<8x1xf32>
    %104 = arith.divf %103, %102 : vector<8x1xf32>
    %105 = vector.broadcast %104 : vector<8x1xf32> to vector<8x128xf32>
    %106 = arith.mulf %100, %105 : vector<8x128xf32>
    %c0_44 = arith.constant 0 : index
    %c0_45 = arith.constant 0 : index
    %107 = vector.load %arg9[%c0_44, %c0_45] : memref<8x128xf32, #tpu.memory_space<vmem>>, vector<8x128xf32>
    tpu.vector_store %arg9[%c0_44, %c0_45], %106 {strides = array<i32>} : memref<8x128xf32, #tpu.memory_space<vmem>>, vector<8x128xf32>,
    return
  }
  func.func @transform_0(%arg0: i32) -> (i32, i32, i32) {
    %c0_i32 = arith.constant 0 : i32
    %c0_i32_0 = arith.constant 0 : i32
    %c0_i32_1 = arith.constant 0 : i32
    return %c0_i32, %arg0, %c0_i32_0 : i32, i32, i32
  }
  func.func @transform_1(%arg0: i32) -> (i32, i32, i32, i32) {
    %c0_i32 = arith.constant 0 : i32
    %c0_i32_0 = arith.constant 0 : i32
    %c0_i32_1 = arith.constant 0 : i32
    %c0_i32_2 = arith.constant 0 : i32
    return %arg0, %c0_i32, %c0_i32_0, %c0_i32_1 : i32, i32, i32, i32
  }
  func.func @transform_2(%arg0: i32) -> (i32, i32) {
    %c0_i32 = arith.constant 0 : i32
    %c0_i32_0 = arith.constant 0 : i32
    %c0_i32_1 = arith.constant 0 : i32
    return %c0_i32, %c0_i32_0 : i32, i32
  }
  func.func @transform_3(%arg0: i32) -> (i32, i32) {
    %c0_i32 = arith.constant 0 : i32
    %c0_i32_0 = arith.constant 0 : i32
    %c0_i32_1 = arith.constant 0 : i32
    return %c0_i32, %c0_i32_0 : i32, i32
  }
  func.func @transform_4(%arg0: i32) -> (i32, i32) {
    %c0_i32 = arith.constant 0 : i32
    %c0_i32_0 = arith.constant 0 : i32
    %c0_i32_1 = arith.constant 0 : i32
    return %c0_i32, %c0_i32_0 : i32, i32
  }
  func.func @transform_5(%arg0: i32) -> (i32, i32) {
    %c0_i32 = arith.constant 0 : i32
    %c0_i32_0 = arith.constant 0 : i32
    %c0_i32_1 = arith.constant 0 : i32
    return %c0_i32, %c0_i32_0 : i32, i32
  }
  func.func @transform_6(%arg0: i32) -> (i32, i32, i32) {
    %c0_i32 = arith.constant 0 : i32
    %c0_i32_0 = arith.constant 0 : i32
    %c0_i32_1 = arith.constant 0 : i32
    %c0_i32_2 = arith.constant 0 : i32
    return %c0_i32, %c0_i32_0, %c0_i32_1 : i32, i32, i32
  }
  func.func @transform_7(%arg0: i32) -> (i32, i32) {
    %c0_i32 = arith.constant 0 : i32
    %c0_i32_0 = arith.constant 0 : i32
    %c0_i32_1 = arith.constant 0 : i32
    return %c0_i32, %c0_i32_0 : i32, i32
  }
  func.func @transform_8(%arg0: i32) -> (i32, i32) {
    %c0_i32 = arith.constant 0 : i32
    %c0_i32_0 = arith.constant 0 : i32
    return %arg0, %c0_i32 : i32, i32
  }
}

</mosaic_0001>

<bundles_post_ra>
// kernel: tpu_custom_call.1
= control target key start
LH: loop header
LB: loop body
LE: loop exit
PB: predicated region body
PF: predicated region fallthrough
CT: control target
= control target key end

     0   :  { %13 = vsyncpa [#allocation3], 0  ;;  %s890_s0 = inlined_call_operand.hbm [shape: f32[1,8,16], index: 0, kind: input, shape index: {}]   ;;  %s891_s1 = inlined_call_operand.hbm [shape: f32[1,1,8,16], index: 1, kind: input, shape index: {}]   ;;  %s892_s2 = inlined_call_operand.hbm [shape: f32[16,32], index: 2, kind: input, shape index: {}]   ;;  %s893_s3 = inlined_call_operand.vmem [shape: f32[32,32], index: 3, kind: input, shape index: {}]   ;;  %s894_s4 = inlined_call_operand.vmem [shape: f32[1,32], index: 4, kind: input, shape index: {}]   ;;  %s895_s5 = inlined_call_operand.hbm [shape: f32[32,134], index: 5, kind: input, shape index: {}]   ;;  %s896_s6 = inlined_call_operand.vmem [shape: f32[2,6,128], index: 6, kind: input, shape index: {}]   ;;  %s897_s7 = inlined_call_operand.vmem [shape: f32[1,128], index: 7, kind: input, shape index: {}]   ;;  %s898_s8 = inlined_call_operand.hbm [shape: f32[8,128], index: 8, kind: output, shape index: {}]  }
   0x1   :  { %14 = vsyncpa [#allocation6], 0 }
   0x2   :  { %15 = vsyncpa [#allocation9], 0 }
   0x3   :  { %16 = vsyncpa [#allocation4], 0  ;;  %s745_s3 = smov [#allocation5]   ;;  %s746_s28 = smov [#allocation2]  }
   0x4   :  { %s33_s27 = sshll.u32 %s745_s3, 4  ;;  %s23_s29 = sshll.u32 %s746_s28, 4  ;;  %s34_s27 = int_to_ptr.vmem [resolvable:$true] %s33_s27  ;;  %s24_s29 = int_to_ptr.vmem [resolvable:$true] %s23_s29 }
   0x5   :  { %s627_s10 = scalar_lea.hbm %s891_s1, 128 }
   0x6   :  { %p628_p0 = scmp.ne.s32.totalorder %s891_s1, %s627_s10  ;;  %p631_p1 = scmp.lt.u32.totalorder %s627_s10, %s891_s1 }
   0x8   :  { %p633_p2 = pnand %p631_p1, %p628_p0 }
   0xa   :  { %636 = shalt.err (!%p633_p2)
}
   0xb   :  { %s637_s15 = scalar_lea.vmem %s34_s27, 128  ;;  %p642_p4 = scmp.lt.s32.totalorder %s34_s27, %s34_s27 }
   0xc   :  { %p638_p3 = scmp.ne.s32.totalorder %s34_s27, %s637_s15  ;;  %p643_p5 = scmp.lt.s32.totalorder %s637_s15, %s637_s15 }
   0xe   :  { %p644_p6 = por %p643_p5, %p642_p4 }
  0x10   :  { %p645_p7 = pnand %p644_p6, %p638_p3 }
  0x12   :  { %648 = shalt.err (!%p645_p7)
}
  0x13   :  { %36 = dma.hbm_to_vmem [thread:$0]  %s891_s1, 128, %s34_s27, [#allocation6]  }
  0x14   :  { %s649_s20 = scalar_lea.hbm %s890_s0, 128 }
  0x15   :  { %p650_p8 = scmp.ne.s32.totalorder %s890_s0, %s649_s20  ;;  %p653_p9 = scmp.lt.u32.totalorder %s649_s20, %s890_s0 }
  0x17   :  { %p655_p10 = pnand %p653_p9, %p650_p8 }
  0x19   :  { %658 = shalt.err (!%p655_p10)
}
  0x1a   :  { %s659_s25 = scalar_lea.vmem %s24_s29, 128  ;;  %p664_p12 = scmp.lt.s32.totalorder %s24_s29, %s24_s29 }
  0x1b   :  { %p660_p11 = scmp.ne.s32.totalorder %s24_s29, %s659_s25  ;;  %p665_p13 = scmp.lt.s32.totalorder %s659_s25, %s659_s25 }
  0x1d   :  { %p666_p0 = por %p665_p13, %p664_p12 }
  0x1f   :  { %p667_p1 = pnand %p666_p0, %p660_p11 }
  0x21   :  { %670 = shalt.err (!%p667_p1)
}
  0x22   :  { %26 = dma.hbm_to_vmem [thread:$0]  %s890_s0, 128, %s24_s29, [#allocation3]  }
  0x23   :  { %s747_s3 = smov [#allocation7]   ;;  %s671_s9 = scalar_lea.hbm %s892_s2, 256 }
  0x24   :  { %s42_s27 = sshll.u32 %s747_s3, 4  ;;  %p672_p2 = scmp.ne.s32.totalorder %s892_s2, %s671_s9  ;;  %s43_s27 = int_to_ptr.vmem [resolvable:$true] %s42_s27 }
  0x25   :  { %p675_p3 = scmp.lt.u32.totalorder %s671_s9, %s892_s2 }
  0x27   :  { %p677_p4 = pnand %p675_p3, %p672_p2 }
  0x29   :  { %680 = shalt.err (!%p677_p4)
}
  0x2a   :  { %s681_s14 = scalar_lea.vmem %s43_s27, 256  ;;  %p686_p6 = scmp.lt.s32.totalorder %s43_s27, %s43_s27 }
  0x2b   :  { %p682_p5 = scmp.ne.s32.totalorder %s43_s27, %s681_s14  ;;  %p687_p7 = scmp.lt.s32.totalorder %s681_s14, %s681_s14 }
  0x2d   :  { %p688_p8 = por %p687_p7, %p686_p6 }
  0x2f   :  { %p689_p9 = pnand %p688_p8, %p682_p5 }
  0x31   :  { %692 = shalt.err (!%p689_p9)
}
  0x32   :  { %s748_s0 = smov 128   ;;  %s749_s29 = smov 8  }
  0x33   :  { %48 = dma.hbm_to_vmem [thread:$0]  %s892_s2, 256, %s43_s27, [#allocation6], %s748_s0, %s748_s0, %s749_s29  }
  0x34   :  { %s750_s17 = smov [#allocation8]   ;;  %s693_s21 = scalar_lea.hbm %s895_s5, 1024 }
  0x35   :  { %s58_s18 = sshll.u32 %s750_s17, 4  ;;  %p694_p10 = scmp.ne.s32.totalorder %s895_s5, %s693_s21  ;;  %s59_s18 = int_to_ptr.vmem [resolvable:$true] %s58_s18 }
  0x36   :  { %p697_p11 = scmp.lt.u32.totalorder %s693_s21, %s895_s5 }
  0x38   :  { %p699_p12 = pnand %p697_p11, %p694_p10 }
  0x3a   :  { %702 = shalt.err (!%p699_p12)
}
  0x3b   :  { %s703_s1 = scalar_lea.vmem %s59_s18, 1024  ;;  %p708_p0 = scmp.lt.s32.totalorder %s59_s18, %s59_s18 }
  0x3c   :  { %p704_p13 = scmp.ne.s32.totalorder %s59_s18, %s703_s1  ;;  %p709_p1 = scmp.lt.s32.totalorder %s703_s1, %s703_s1 }
  0x3e   :  { %p710_p2 = por %p709_p1, %p708_p0 }
  0x40   :  { %p711_p3 = pnand %p710_p2, %p704_p13 }
  0x42   :  { %714 = shalt.err (!%p711_p3)
}
  0x43   :  { %s751_s2 = smov 256   ;;  %s752_s26 = smov 16  }
  0x44   :  { %64 = dma.hbm_to_vmem [thread:$0]  %s895_s5, 1024, %s59_s18, [#allocation9], %s751_s2, %s751_s2, %s752_s26  }
  0x45   :  { %737 = dma.done.wait [#allocation3], 128  }
  0x46   :  { %738 = vsyncadd [#allocation3], 4294967168 }
  0x47   :  { %739 = dma.done.wait [#allocation6], 384  }
  0x48   :  { %740 = vsyncadd [#allocation6], 4294966912 }
  0x49   :  { %741 = dma.done.wait [#allocation9], 1024  }
  0x4a   :  { %742 = vsyncadd [#allocation9], 4294966272  ;;  %vm92_vm0 = vcmask 130048   ;;  %v83_v0 = vld [vmem:[#allocation7] sm:$0xff]  ;;  %v84_v1 = vld [vmem:[#allocation7 + $0x8] sm:$0xff]  ;;  %v753_v12 = vmov 0.0   ;;  %v275_v26 = vlaneseq }
  0x4b   :  { %v81_v2 = vld [vmem:[#allocation5] sm:$0xff]  ;;  %v592_v3 = vpack.c.bf16 %v84_v1, %v83_v0  ;;  %v82_v4 = vld [vmem:[#allocation2] sm:$0xff]  ;;  %v179_v6 = vld [vmem:[#allocation8 + $0x18] sm:$0xff]  ;;  %255 = vmatprep.mubr.f32.mxu1 %v753_v12  ;;  %vm184_vm1 = vcmask 261120   ;;  %vm364_vm2 = vcmask 1045504   ;;  %vm754_vm3 = vmmov 0  }
  0x4c   :  { %579 = vmatprep.mubr.msk.f32.mxu0 %vm92_vm0, %v81_v2  ;;  %v177_v5 = vld [vmem:[#allocation8 + $0x8] sm:$0xff]  ;;  %v176_v7 = vld [vmem:[#allocation8] sm:$0xff]  ;;  %v178_v9 = vld [vmem:[#allocation8 + $0x10] sm:$0xff]  ;;  %v276_v29 = vshrl.u32 %v275_v26, 7  ;;  %v293_v32 = vrot.slane %v753_v12, 7  ;;  %vm360_vm12 = vcmask 48128  }
  0x4d   :  { %593 = vmatprep.subr.bf16.mxu0 %v592_v3  ;;  %v596_v8 = vpack.c.bf16 %v179_v6, %v177_v5  ;;  %v181_v10 = vld [vmem:[#allocation8 + $0x28] sm:$0xff]  ;;  %v183_v11 = vld [vmem:[#allocation8 + $0x38] sm:$0xff]  ;;  %v598_v13 = vpack.c.bf16 %v178_v9, %v176_v7  ;;  %v180_v15 = vld [vmem:[#allocation8 + $0x20] sm:$0xff] }
  0x4e   :  { %595 = vmatpush3.bf16.msra.mxu0 %v592_v3  ;;  %v600_v14 = vpack.c.bf16 %v183_v11, %v181_v10  ;;  %v182_v16 = vld [vmem:[#allocation8 + $0x30] sm:$0xff]  ;;  %v556_v18 = vld [vmem:[%s894_s4] ss:$0 sm:$0xff]  ;;  %v348_v30 = vadd.s32 1, %v276_v29  ;;  %vm295_vm4 = vcmp.lt.s32.totalorder %v276_v29, 1  ;;  %vm291_vm5 = vcmp.ge.s32.totalorder %v276_v29, 1 }
  0x4f   :  { %582 = vmatprep.subr.mxu0 %v753_v12  ;;  %597 = vmatprep.subr.bf16.mxu1 %v596_v8  ;;  %v602_v17 = vpack.c.bf16 %v182_v16, %v180_v15  ;;  %v359_v25 = vld [vmem:[%s896_s6] sm:$0x3f]  ;;  %vm310_vm7 = vcmp.lt.s32.totalorder %v276_v29, 2  ;;  %vm306_vm8 = vcmp.ge.s32.totalorder %v276_v29, 2  ;;  %vm325_vm10 = vcmp.lt.s32.totalorder %v276_v29, 4 }
  0x50   :  { %599 = vmatpush1.bf16.msra.mxu1 %v598_v13  ;;  %vm352_vm6 = vcmp.lt.s32.totalorder %v348_v30, 2  ;;  %vm442_vm9 = vcmp.lt.s32.totalorder %v348_v30, 4  ;;  %vm321_vm11 = vcmp.ge.s32.totalorder %v276_v29, 4  ;;  %v561_v7 = vld [vmem:[%s897_s7] ss:$0 sm:$0xff] }
  0x51   :  { %580 = vmatmul.mubr.msk.f32.vlgmr.msra.gmra.mrb[0].mxu0 %vm92_vm0, %v82_v4  ;;  %601 = vmatprep.subr.bf16.mxu1 %v600_v14  ;;  %v353_v40 = vsel %vm352_vm6, %v348_v30, 2  ;;  %v443_v47 = vsel %vm442_vm9, %v348_v30, 4  ;;  %v564_v4 = vld [vmem:[%s896_s6 + $0x8] sm:$0x3f]  ;;  %s755_s6 = smov [#allocation10]  }
  0x52   :  { %583 = vmatpush3.msk.msra.mxu0 %vm364_vm2, %v359_v25  ;;  %584 = vmatprep.mubr.msk.f32.mxu0 %vm754_vm3, %v753_v12  ;;  %v354_v44 = vcvt.s32.f32 %v353_v40  ;;  %v444_v51 = vcvt.s32.f32 %v443_v47  ;;  %s545_s13 = sshll.u32 %s755_s6, 4  ;;  %s546_s13 = int_to_ptr.vmem [resolvable:$true] %s545_s13 }
  0x53   :  { %587 = vmatprep.subr.mxu0 %v753_v12  ;;  %s715_s7 = scalar_lea.vmem %s546_s13, 128  ;;  %p720_p5 = scmp.lt.s32.totalorder %s546_s13, %s546_s13 }
  0x54   :  { %603 = vmatpush1.bf16.msra.mxu1 %v602_v17  ;;  %p716_p4 = scmp.ne.s32.totalorder %s546_s13, %s715_s7  ;;  %p721_p6 = scmp.lt.s32.totalorder %s715_s7, %s715_s7 }
  0x56   :  { %p722_p7 = por %p721_p6, %p720_p5 }
  0x58   :  { %p723_p8 = pnand %p722_p7, %p716_p4 }
 0x124   :  { %v581_v19 = vpop.f32.mrb[0].mxu0 }
 0x125   :  { %v165_v20 = vpop.f32.mrb[1].mxu0  ;;  %v171_v22 = vadd.f32 %v581_v19, %v556_v18 }
 0x126   :  { %v166_v21 = vadd.f32 %v556_v18, %v165_v20 }
 0x128   :  { %615 = vtanh.f32 %v166_v21 }
 0x129   :  { %617 = vtanh.f32 %v171_v22 }
 0x12a   :  { %619 = vrcp.f32 %v354_v44 }
 0x12b   :  { %621 = vrcp.f32 %v444_v51 }
 0x132   :  { %v616_v23 = vpop.eup %615 }
 0x133   :  { %559 = vmatmul.mubr.msk.f32.vlgmr.msra.gmra.mrb[0].mxu1 %vm184_vm1, %v616_v23  ;;  %v618_v24 = vpop.eup %617 }
 0x134   :  { %260 = vmatprep.mubr.f32.mxu1 %v753_v12  ;;  %v620_v62 = vpop.eup %619 }
 0x135   :  { %v622_v5 = vpop.eup %621 }
 0x137   :  { %560 = vmatmul.mubr.msk.f32.gmra.mrb[2].mxu1 %vm184_vm1, %v618_v24 }
 0x206   :  { %v257_v27 = vpop.f32.mrb[0].mxu1 }
 0x207   :  { %v258_v28 = vpop.f32.mrb[1].mxu1 }
 0x20a   :  { %v262_v31 = vpop.f32.mrb[2].mxu1 }
 0x20b   :  { %v264_v33 = vpop.f32.mrb[3].mxu1  ;;  %v274_v8 = vadd.f32 %v561_v7, %v262_v31 }
 0x20c   :  { %v294_v34 = vrot.slane %v264_v33, 7 }
 0x20e   :  { %v296_v35 = vsel %vm295_vm4, %v293_v32, %v294_v34  ;;  %v297_v36 = vsel %vm295_vm4, %v294_v34, %v293_v32 }
 0x20f   :  { %v302_v37 = vsel %vm291_vm5, %v297_v36, 0.0  ;;  %v305_v38 = vadd.f32 %v296_v35, %v264_v33 }
 0x210   :  { %v308_v39 = vrot.slane %v302_v37, 6 }
 0x211   :  { %v309_v41 = vrot.slane %v305_v38, 6 }
 0x213   :  { %v311_v42 = vsel %vm310_vm7, %v308_v39, %v309_v41  ;;  %v312_v43 = vsel %vm310_vm7, %v309_v41, %v308_v39 }
 0x214   :  { %v317_v45 = vsel %vm306_vm8, %v312_v43, 0.0  ;;  %v320_v46 = vadd.f32 %v311_v42, %v305_v38 }
 0x215   :  { %v319_v48 = vadd.f32 %v317_v45, %v302_v37 }
 0x216   :  { %v324_v49 = vrot.slane %v320_v46, 4 }
 0x217   :  { %v323_v50 = vrot.slane %v319_v48, 4 }
 0x219   :  { %v326_v52 = vsel %vm325_vm10, %v323_v50, %v324_v49  ;;  %v327_v53 = vsel %vm325_vm10, %v324_v49, %v323_v50 }
 0x21a   :  { %v332_v54 = vsel %vm321_vm11, %v327_v53, 0.0  ;;  %v335_v55 = vadd.f32 %v326_v52, %v320_v46 }
 0x21b   :  { %v334_v56 = vadd.f32 %v332_v54, %v319_v48 }
 0x21d   :  { %v345_v57 = vadd.f32 %v335_v55, %v334_v56  ;;  %v349_v58 = vrot.slane %v334_v56, 6  ;;  %v439_v60 = vrot.slane %v334_v56, 4 }
 0x21f   :  { %v350_v59 = vrot.slane %v345_v57, 6  ;;  %v440_v61 = vrot.slane %v345_v57, 4 }
 0x221   :  { %v351_v63 = vsel %vm310_vm7, %v349_v58, %v350_v59  ;;  %v441_v0 = vsel %vm325_vm10, %v439_v60, %v440_v61 }
 0x222   :  { %v355_v1 = vsub.f32 %v345_v57, %v351_v63  ;;  %v445_v3 = vsub.f32 %v345_v57, %v441_v0 }
 0x224   :  { %v358_v2 = vmul.f32 %v620_v62, %v355_v1  ;;  %v448_v6 = vmul.f32 %v622_v5, %v445_v3 }
 0x226   :  { %585 = vmatmul.mubr.msk.f32.vlgmr.msra.gmra.mrb[2].mxu0 %vm360_vm12, %v358_v2 }
 0x227   :  { %588 = vmatpush3.msk.msra.mxu0 %vm364_vm2, %v564_v4  ;;  %589 = vmatprep.mubr.msk.f32.mxu0 %vm754_vm3, %v753_v12 }
 0x22a   :  { %590 = vmatmul.mubr.msk.f32.vlgmr.msra.gmra.mrb[4].mxu0 %vm360_vm12, %v448_v6 }
 0x2f9   :  { %v434_v9 = vpop.f32.mrb[2].mxu0 }
 0x2fa   :  { %v438_v10 = vadd.f32 %v434_v9, %v274_v8  ;;  %v586_v11 = vpop.f32.mrb[3].mxu0 }
 0x2fd   :  { %v523_v13 = vpop.f32.mrb[4].mxu0 }
 0x2fe   :  { %v527_v14 = vadd.f32 %v523_v13, %v438_v10  ;;  %v591_v15 = vpop.f32.mrb[5].mxu0 }
 0x300   :  { %528 = vmax.xlane.f32.xlu0 %v527_v14 }
 0x38d   :  { %v529_v16 = vpop.xlane.xlu0 %528 }
 0x38e   :  { %v530_v17 = vsub.f32 %v527_v14, %v529_v16 }
 0x390   :  { %v531_v18 = vmul.f32 1.442695, %v530_v17 }
 0x392   :  { %623 = vpow2.f32 %v531_v18 }
 0x39c   :  { %v624_v19 = vpop.eup %623 }
 0x39d   :  { %533 = vadd.xlane.f32.xlu0 %v624_v19 }
 0x42a   :  { %v534_v12 = vpop.xlane.xlu0 %533 }
 0x42b   :  { %625 = vrcp.f32 %v534_v12 }
 0x435   :  { %v626_v20 = vpop.eup %625 }
 0x436   :  { %v537_v21 = vmul.f32 %v626_v20, %v624_v19 }
 0x438   :  { %538 = vst [vmem:[#allocation10] sm:$0xff] %v537_v21 }
 0x439   :  { %726 = shalt.err (!%p723_p8)
}
 0x43a   :  { %s727_s29 = scalar_lea.hbm %s898_s8, 128 }
 0x43b   :  { %p728_p9 = scmp.ne.s32.totalorder %s898_s8, %s727_s29  ;;  %p731_p10 = scmp.lt.u32.totalorder %s727_s29, %s898_s8 }
 0x43d   :  { %p733_p11 = pnand %p731_p10, %p728_p9 }
 0x43f   :  { %736 = shalt.err (!%p733_p11)
}
 0x440   :  { %548 = dma.vmem_to_hbm [thread:$0]  %s546_s13, 128, %s898_s8, [#allocation4]  }
 0x441   :  { %743 = dma.done.wait [#allocation4], 128  }
 0x442   :  { %744 = vsyncadd [#allocation4], 4294967168 }
 0x443   :  { %552 = vsyncpa [#allocation3], 1 }
 0x444   :  { %553 = vsyncpa [#allocation6], 1 }
 0x445   :  { %554 = vsyncpa [#allocation9], 1 }
 0x446   :  { %555 = vsyncpa [#allocation4], 1 }

</bundles_post_ra>
